<compile_context>
chip_gen: v5e
topology: v5e:2x2
jax: 0.10.0
libtpu: 0.0.40
codegen_flags: <defaults>
</compile_context>

<pallas_src>
import functools

import jax
import jax.numpy as jnp
from jax import lax
from jax.experimental import pallas as pl
from jax.experimental.pallas import tpu as pltpu

EPS = 1e-5


def _pick_row_tile(H, W, Cin, max_bytes=2 * 1024 * 1024):
    """Largest even divisor TH of H whose (TH, W, Cin) fp32 tile fits max_bytes."""
    for th in range(H, 1, -1):
        if H % th == 0 and th % 2 == 0 and th * W * Cin * 4 <= max_bytes:
            return th
    return 2


# ---------------------------------------------------------------------------
# Pass 1: per-channel sum / sum-of-squares accumulation (BN batch statistics)
# ---------------------------------------------------------------------------
def _stats_kernel(x_ref, stats_ref):
    # x_ref: (1, TH, W, Cin) tile; stats_ref: (2, Cin) accumulator (row0=sum,
    # row1=sum of squares), resident across the whole (reduction) grid.
    x = x_ref[...].astype(jnp.float32)
    xr = x.reshape(-1, x.shape[-1])                         # (TH*W, Cin)
    s = jnp.sum(xr, axis=0, keepdims=True)                  # (1, Cin)
    ss = jnp.sum(xr * xr, axis=0, keepdims=True)            # (1, Cin)

    @pl.when((pl.program_id(0) == 0) & (pl.program_id(1) == 0))
    def _():
        stats_ref[...] = jnp.zeros_like(stats_ref)

    stats_ref[...] += jnp.concatenate([s, ss], axis=0)


# ---------------------------------------------------------------------------
# Pass 2: BN-affine + ReLU + 2x2 avg-pool + 1x1 conv (matmul), fused per tile
# ---------------------------------------------------------------------------
def _make_fused_kernel(TH, W, Cin, Cout, inv_m):
    THo, Wo = TH // 2, W // 2

    def kernel(stats_ref, gamma_ref, beta_ref, w_ref, x_ref, out_ref):
        # Finalize BN affine from one-pass stats (tiny per-channel work, fp32).
        mean = stats_ref[0:1, :] * inv_m                    # (1, Cin)
        var = stats_ref[1:2, :] * inv_m - mean * mean
        scale = gamma_ref[...] * lax.rsqrt(var + EPS)       # (1, Cin)
        shift = beta_ref[...] - mean * scale                # (1, Cin)

        # BN + ReLU on the tile (VPU).
        x = x_ref[0].astype(jnp.float32)                    # (TH, W, Cin)
        z = jnp.maximum(x * scale[None] + shift[None], 0.0)

        # 2x2 average pool BEFORE the 1x1 conv (exact; 4x fewer matmul rows).
        zh = z[0::2, :, :] + z[1::2, :, :]                  # (THo, W, Cin)
        pooled = 0.25 * (zh[:, 0::2, :] + zh[:, 1::2, :])   # (THo, Wo, Cin)

        # 1x1 conv as a single MXU matmul over the pooled rows.
        y = jnp.dot(pooled.reshape(THo * Wo, Cin), w_ref[...],
                    preferred_element_type=jnp.float32)     # (THo*Wo, Cout)
        out_ref[...] = y.reshape(1, THo, Wo, Cout).astype(out_ref.dtype)

    return kernel


# ---------------------------------------------------------------------------
# Public wrapper: PyTorch-convention NCHW in / NCHW out
# ---------------------------------------------------------------------------
def transition_forward(x_nchw, gamma, beta, w_pt):
    """Transition.forward.  x_nchw: (N, Cin, H, W); w_pt: (Cout, Cin, 1, 1)."""
    N, Cin, H, W = x_nchw.shape
    Cout = w_pt.shape[0]
    assert H % 2 == 0 and W % 2 == 0  # TODO(synk): odd spatial sizes (floor pool) need masked tails
    Ho, Wo = H // 2, W // 2

    x = jnp.transpose(x_nchw, (0, 2, 3, 1)).astype(jnp.float32)   # NHWC
    gamma2 = gamma.reshape(1, Cin).astype(jnp.float32)
    beta2 = beta.reshape(1, Cin).astype(jnp.float32)
    w = jnp.transpose(w_pt.reshape(Cout, Cin), (1, 0)).astype(jnp.float32)  # (Cin, Cout)

    TH = _pick_row_tile(H, W, Cin)
    grid = (N, H // TH)
    inv_m = 1.0 / float(N * H * W)

    vmem_limit = 48 * 1024 * 1024
    cparams_red = pltpu.CompilerParams(
        dimension_semantics=("arbitrary", "arbitrary"),
        vmem_limit_bytes=vmem_limit)
    cparams_par = pltpu.CompilerParams(
        dimension_semantics=("parallel", "parallel"),
        vmem_limit_bytes=vmem_limit)

    # -- pass 1: BN batch statistics --
    stats = pl.pallas_call(
        _stats_kernel,
        out_shape=jax.ShapeDtypeStruct((2, Cin), jnp.float32),
        grid=grid,
        in_specs=[pl.BlockSpec((1, TH, W, Cin), lambda n, h: (n, h, 0, 0))],
        out_specs=pl.BlockSpec((2, Cin), lambda n, h: (0, 0)),
        compiler_params=cparams_red,
    )(x)

    # -- pass 2: fused BN-affine + ReLU + pool + 1x1 conv --
    kernel = _make_fused_kernel(TH, W, Cin, Cout, inv_m)
    out_nhwc = pl.pallas_call(
        kernel,
        out_shape=jax.ShapeDtypeStruct((N, Ho, Wo, Cout), jnp.float32),
        grid=grid,
        in_specs=[
            pl.BlockSpec((2, Cin), lambda n, h: (0, 0)),          # stats
            pl.BlockSpec((1, Cin), lambda n, h: (0, 0)),          # gamma
            pl.BlockSpec((1, Cin), lambda n, h: (0, 0)),          # beta
            pl.BlockSpec((Cin, Cout), lambda n, h: (0, 0)),       # conv weight
            pl.BlockSpec((1, TH, W, Cin), lambda n, h: (n, h, 0, 0)),
        ],
        out_specs=pl.BlockSpec((1, TH // 2, W // 2, Cout), lambda n, h: (n, h, 0, 0)),
        compiler_params=cparams_par,
    )(stats, gamma2, beta2, w, x)

    return jnp.transpose(out_nhwc, (0, 3, 1, 2))   # back to NCHW


# ---------------------------------------------------------------------------
# Pure-JAX reference (same math, PyTorch op order) for correctness checking
# ---------------------------------------------------------------------------
def reference_forward(x_nchw, gamma, beta, w_pt):
    N, C, H, W = x_nchw.shape
    Cout = w_pt.shape[0]
    mean = jnp.mean(x_nchw, axis=(0, 2, 3), keepdims=True)
    var = jnp.mean((x_nchw - mean) ** 2, axis=(0, 2, 3), keepdims=True)
    xn = (x_nchw - mean) / jnp.sqrt(var + EPS) * gamma.reshape(1, C, 1, 1) \
         + beta.reshape(1, C, 1, 1)
    z = jnp.maximum(xn, 0.0)
    y = jnp.einsum('nchw,oc->nohw', z, w_pt.reshape(Cout, C))     # 1x1 conv, no bias
    y = y.reshape(N, Cout, H // 2, 2, W // 2, 2).mean(axis=(3, 5))  # avg_pool2d(2)
    return y


if __name__ == "__main__":
    # Small, module-consistent config: in_planes=64 -> out_planes=32,
    # batch=2, spatial 16x16 (even, so the 2x2 pool is exact).
    in_planes, out_planes = 64, 32
    N, H, W = 2, 16, 16

    key = jax.random.PRNGKey(0)
    kx, kg, kb, kw = jax.random.split(key, 4)
    x = jax.random.normal(kx, (N, in_planes, H, W), jnp.float32)          # NCHW
    gamma = 1.0 + 0.1 * jax.random.normal(kg, (in_planes,), jnp.float32)
    beta = 0.1 * jax.random.normal(kb, (in_planes,), jnp.float32)
    w_pt = 0.1 * jax.random.normal(kw, (out_planes, in_planes, 1, 1), jnp.float32)

    out = jax.block_until_ready(transition_forward(x, gamma, beta, w_pt))
    ref = reference_forward(x, gamma, beta, w_pt)

    assert out.shape == (N, out_planes, H // 2, W // 2), out.shape
    max_err = float(jnp.max(jnp.abs(out - ref)))
    assert jnp.allclose(out, ref, atol=1e-4, rtol=1e-4), max_err
    print("KERNEL_OK")
</pallas_src>

<mosaic_0001>
module attributes {stable_mosaic.version = 11 : i64} {
  func.func @_stats_kernel(%arg0: i32, %arg1: i32, %arg2: memref<1x16x16x64xf32, #tpu.memory_space<vmem>>, %arg3: memref<2x64xf32, #tpu.memory_space<vmem>>) attributes {dimension_semantics = [#tpu.dimension_semantics<arbitrary>, #tpu.dimension_semantics<arbitrary>], iteration_bounds = array<i64: 2, 1>, scalar_prefetch = 0 : i64, scratch_operands = 0 : i64, tpu.core_type = #tpu.core_type<tc>, window_params = [{transform_indices = @transform_0, window_bounds = array<i64: 1, 16, 16, 64>}, {pipeline_mode = #tpu.pipeline_mode<synchronous>, transform_indices = @transform_1, window_bounds = array<i64: 2, 64>}]} {
    %c0 = arith.constant 0 : index
    %c0_0 = arith.constant 0 : index
    %c0_1 = arith.constant 0 : index
    %c0_2 = arith.constant 0 : index
    %0 = vector.load %arg2[%c0, %c0_0, %c0_1, %c0_2] : memref<1x16x16x64xf32, #tpu.memory_space<vmem>>, vector<1x16x16x64xf32>
    %1 = vector.shape_cast %0 : vector<1x16x16x64xf32> to vector<256x64xf32>
    %cst = arith.constant dense<0.000000e+00> : vector<64xf32>
    %2 = vector.multi_reduction <add>, %1, %cst [0] : vector<256x64xf32> to vector<64xf32>
    %3 = vector.shape_cast %2 : vector<64xf32> to vector<1x64xf32>
    %4 = arith.mulf %1, %1 : vector<256x64xf32>
    %cst_3 = arith.constant dense<0.000000e+00> : vector<64xf32>
    %5 = vector.multi_reduction <add>, %4, %cst_3 [0] : vector<256x64xf32> to vector<64xf32>
    %6 = vector.shape_cast %5 : vector<64xf32> to vector<1x64xf32>
    %c0_i32 = arith.constant 0 : i32
    %7 = arith.cmpi eq, %arg0, %c0_i32 : i32
    %c0_i32_4 = arith.constant 0 : i32
    %8 = arith.cmpi eq, %arg1, %c0_i32_4 : i32
    %9 = arith.andi %7, %8 : i1
    %10 = arith.extui %9 : i1 to i32
    %c0_i32_5 = arith.constant 0 : i32
    %11 = arith.cmpi ne, %10, %c0_i32_5 : i32
    scf.if %11 {
      %cst_10 = arith.constant 0.000000e+00 : f32
      %16 = vector.broadcast %cst_10 : f32 to vector<2x64xf32>
      %c0_11 = arith.constant 0 : index
      %c0_12 = arith.constant 0 : index
      %17 = vector.load %arg3[%c0_11, %c0_12] : memref<2x64xf32, #tpu.memory_space<vmem>>, vector<2x64xf32>
      tpu.vector_store %arg3[%c0_11, %c0_12], %16 {strides = array<i32>} : memref<2x64xf32, #tpu.memory_space<vmem>>, vector<2x64xf32>,
    } else {
    }
    %c0_6 = arith.constant 0 : index
    %c0_7 = arith.constant 0 : index
    %12 = vector.load %arg3[%c0_6, %c0_7] : memref<2x64xf32, #tpu.memory_space<vmem>>, vector<2x64xf32>
    %13 = tpu.concatenate %3, %6 in 0 : vector<1x64xf32>, vector<1x64xf32> -> vector<2x64xf32>
    %14 = arith.addf %12, %13 : vector<2x64xf32>
    %c0_8 = arith.constant 0 : index
    %c0_9 = arith.constant 0 : index
    %15 = vector.load %arg3[%c0_8, %c0_9] : memref<2x64xf32, #tpu.memory_space<vmem>>, vector<2x64xf32>
    tpu.vector_store %arg3[%c0_8, %c0_9], %14 {strides = array<i32>} : memref<2x64xf32, #tpu.memory_space<vmem>>, vector<2x64xf32>,
    return
  }
  func.func @transform_0(%arg0: i32, %arg1: i32) -> (i32, i32, i32, i32) {
    %c0_i32 = arith.constant 0 : i32
    %c0_i32_0 = arith.constant 0 : i32
    %c0_i32_1 = arith.constant 0 : i32
    return %arg0, %arg1, %c0_i32, %c0_i32_0 : i32, i32, i32, i32
  }
  func.func @transform_1(%arg0: i32, %arg1: i32) -> (i32, i32) {
    %c0_i32 = arith.constant 0 : i32
    %c0_i32_0 = arith.constant 0 : i32
    %c0_i32_1 = arith.constant 0 : i32
    return %c0_i32, %c0_i32_0 : i32, i32
  }
}

</mosaic_0001>

<bundles_post_ra>
// kernel: tpu_custom_call.1
= control target key start
LH: loop header
LB: loop body
LE: loop exit
PB: predicated region body
PF: predicated region fallthrough
CT: control target
= control target key end

     0   :  { %6 = vsyncpa [#allocation3], 0  ;;  %s830_s0 = inlined_call_operand.hbm [shape: f32[2,16,16,64], index: 0, kind: input, shape index: {}]   ;;  %s831_s1 = inlined_call_operand.hbm [shape: f32[2,64], index: 1, kind: output, shape index: {}]  }
   0x1   :  { %8 = vsyncpa [#allocation3 + $0x1], 0 }
   0x2   :  { %9 = vsyncpa [#allocation4], 0  ;;  %s639_s6 = smov 0   ;;  %s641_s7 = smov 0  }
   0x3   :  { %s643_s8 = smov 0   ;;  %s645_s9 = smov 0  }
   0x4   :  { %s647_s10 = smov 0   ;;  %s649_s11 = smov 0  }
   0x5 LB: > { %s431_s12 = sadd.s32 4294967295, %s623_s11   ;;  %s27_s13 = sadd.s32 1, %s619_s10  ;;  %s623_s11 = sphi %s649_s11, %s15_s11   ;;  %s619_s10 = sphi %s647_s10, %s838_s10   ;;  %s615_s9 = sphi %s645_s9, %s837_s9   ;;  %s611_s8 = sphi %s643_s8, %s836_s8   ;;  %s607_s7 = sphi %s641_s7, %s835_s7   ;;  %s603_s6 = sphi %s639_s6, %s834_s6  }
   0x6   : > { %p29_p0 = scmp.ge.s32.totalorder %s27_s13, 2  ;;  %s36_s14 = sadd.s32 1, %s611_s8 }
   0x7   : > { %p43_p1 = scmp.ne.s32.totalorder %s611_s8, %s607_s7  ;;  %p44_p2 = scmp.eq.s32.totalorder %s623_s11, 0 }
   0x8   : > { %s840_s13 = smov (%p29_p0, %s27_s13), 0  ;;  %p49_p4 = scmp.ne.s32.totalorder %s607_s7, %s603_s6 }
   0x9   : > { %p675_p3 = por %p44_p2, %p43_p1  ;;  %s31_s16 = ssub.s32 %s619_s10, %s840_s13 }
   0xa   : > { %p50_p5 = scmp.eq.s32.totalorder %s431_s12, 0  ;;  %p34_p6 = scmp.eq.s32.totalorder %s31_s16, 0 }
   0xb   : > { %p456_p8 = scmp.lt.s32.totalorder %s623_s11, 2  ;;  %s94_s19 = sand.u32 1, %s611_s8  }
   0xc   : > { %p684_p7 = por %p50_p5, %p49_p4  ;;  %s444_s20 = sshll.u32 %s619_s10, 8 }
   0xd   : > { %s690_s18 = scalar_select %p34_p6, %s611_s8, %s36_s14  }
   0xe   : > { %s434_s21 = sshll.u32 %s94_s19, 8  ;;  %s106_s24 = scalar_lea.hbm %s830_s0, %s444_s20 }
   0xf   : > { %s107_s25 = sshll.u32 %s106_s24, 4  ;;  %s98_s26 = scalar_lea.vmem [#allocation2], %s434_s21  ;;  %s108_s25 = int_to_ptr.hbm [resolvable:$true] %s107_s25 }
  0x10   : > { %s109_s27 = sshll.u32 %s98_s26, 4  ;;  %p453_p9 = pnand %p456_p8, %p675_p3  ;;  %s110_s27 = int_to_ptr.vmem [resolvable:$true] %s109_s27 }
  0x11   : > { %p437_p10 = scmp.ge.s32.totalorder %s623_s11, 1  ;;  %p117_p11 = scmp.lt.s32.totalorder %s623_s11, 3 }
  0x12   : > { %s95_s28 = scalar_lea.sflag [#allocation3], %s94_s19  ;;  %s625_s29 = smov 128  }
  0x13   : > { %s626_s30 = smov 8   ;;  %p118_p12 = pnand %p437_p10, %p117_p11 }
  0x14   : > { %455 = dma.hbm_to_vmem [thread:$0]  (!%p453_p9), %s108_s25, 4096, %s110_s27, %s95_s28, %s625_s29, %s625_s29, %s626_s30  }
  0x15   : > { %121 = sbr.rel (%p118_p12) target bundleno = 114 (0x72), region = 24  ;;  %s123_s2 = sand.u32 (!%p118_p12), 1, %s607_s7  }
  0x16   : > { %s438_s3 = sshll.u32 (!%p118_p12), %s123_s2, 8  ;;  %s124_s4 = scalar_lea.sflag (!%p118_p12), [#allocation3], %s123_s2 }
  0x17   : > { %s702_s5 = scalar_lea.vmem (!%p118_p12), [#allocation2], %s438_s3 }
  0x1a   : > { %594 = dma.done.wait (%p684_p7), %s124_s4, 4096  }
  0x1b   : > { %596 = vsyncadd (%p684_p7), %s124_s4, 4294963200  ;;  %p346_p13 = scmp.eq.s32.totalorder %s615_s9, 0  ;;  %vm175_vm0 = vcmask 523264   ;;  %v143_v0 = vld [vmem:[%s702_s5] sm:$0xff]  ;;  %v144_v1 = vld [vmem:[%s702_s5 + $0x8] sm:$0xff] }
  0x1c   : > { %v145_v2 = vld [vmem:[%s702_s5 + $0x10] sm:$0xff]  ;;  %v176_v3 = vsel %vm175_vm0, %v143_v0, 0.0  ;;  %v177_v4 = vsel %vm175_vm0, %v144_v1, 0.0  ;;  %v146_v6 = vld [vmem:[%s702_s5 + $0x18] sm:$0xff]  ;;  %v147_v9 = vld [vmem:[%s702_s5 + $0x20] sm:$0xff]  ;;  %v245_v20 = vmul.f32 %v143_v0, %v143_v0  ;;  %v246_v22 = vmul.f32 %v144_v1, %v144_v1 }
  0x1d   : > { %v179_v5 = vsel %vm175_vm0, %v145_v2, 0.0  ;;  %v178_v7 = vadd.f32 %v177_v4, %v176_v3  ;;  %v181_v8 = vsel %vm175_vm0, %v146_v6, 0.0  ;;  %v183_v11 = vsel %vm175_vm0, %v147_v9, 0.0  ;;  %v148_v12 = vld [vmem:[%s702_s5 + $0x28] sm:$0xff]  ;;  %v149_v15 = vld [vmem:[%s702_s5 + $0x30] sm:$0xff]  ;;  %v150_v18 = vld [vmem:[%s702_s5 + $0x38] sm:$0xff] }
  0x1e   : > { %v185_v14 = vsel %vm175_vm0, %v148_v12, 0.0  ;;  %v187_v17 = vsel %vm175_vm0, %v149_v15, 0.0  ;;  %v189_v21 = vsel %vm175_vm0, %v150_v18, 0.0  ;;  %v247_v23 = vmul.f32 %v145_v2, %v145_v2  ;;  %v151_v24 = vld [vmem:[%s702_s5 + $0x40] sm:$0xff]  ;;  %v152_v28 = vld [vmem:[%s702_s5 + $0x48] sm:$0xff]  ;;  %v153_v35 = vld [vmem:[%s702_s5 + $0x50] sm:$0xff] }
  0x1f   : > { %v180_v10 = vadd.f32 %v179_v5, %v178_v7  ;;  %v191_v26 = vsel %vm175_vm0, %v151_v24, 0.0  ;;  %v248_v27 = vmul.f32 %v146_v6, %v146_v6  ;;  %v277_v30 = vsel %vm175_vm0, %v245_v20, 0.0  ;;  %v154_v41 = vld [vmem:[%s702_s5 + $0x58] sm:$0xff]  ;;  %v155_v47 = vld [vmem:[%s702_s5 + $0x60] sm:$0xff]  ;;  %v156_v53 = vld [vmem:[%s702_s5 + $0x68] sm:$0xff] }
  0x20   : > { %v193_v31 = vsel %vm175_vm0, %v152_v28, 0.0  ;;  %v249_v32 = vmul.f32 %v147_v9, %v147_v9  ;;  %v278_v33 = vsel %vm175_vm0, %v246_v22, 0.0  ;;  %v280_v34 = vsel %vm175_vm0, %v247_v23, 0.0  ;;  %v157_v59 = vld [vmem:[%s702_s5 + $0x70] sm:$0xff]  ;;  %v158_v1 = vld [vmem:[%s702_s5 + $0x78] sm:$0xff]  ;;  %v159_v7 = vld [vmem:[%s702_s5 + $0x80] sm:$0xff] }
  0x21   : > { %v182_v13 = vadd.f32 %v181_v8, %v180_v10  ;;  %v279_v37 = vadd.f32 %v278_v33, %v277_v30  ;;  %v195_v38 = vsel %vm175_vm0, %v153_v35, 0.0  ;;  %v250_v39 = vmul.f32 %v148_v12, %v148_v12 }
  0x22   : > { %v282_v40 = vsel %vm175_vm0, %v248_v27, 0.0  ;;  %v197_v44 = vsel %vm175_vm0, %v154_v41, 0.0  ;;  %v251_v45 = vmul.f32 %v149_v15, %v149_v15  ;;  %v284_v46 = vsel %vm175_vm0, %v249_v32, 0.0 }
  0x23   : > { %v184_v16 = vadd.f32 %v183_v11, %v182_v13  ;;  %v281_v43 = vadd.f32 %v280_v34, %v279_v37  ;;  %v199_v50 = vsel %vm175_vm0, %v155_v47, 0.0  ;;  %v252_v51 = vmul.f32 %v150_v18, %v150_v18  ;;  %v160_v13 = vld [vmem:[%s702_s5 + $0x88] sm:$0xff] }
  0x24   : > { %v286_v52 = vsel %vm175_vm0, %v250_v39, 0.0  ;;  %v201_v56 = vsel %vm175_vm0, %v156_v53, 0.0  ;;  %v253_v57 = vmul.f32 %v151_v24, %v151_v24  ;;  %v288_v58 = vsel %vm175_vm0, %v251_v45, 0.0  ;;  %v164_v37 = vld [vmem:[%s702_s5 + $0xa8] sm:$0xff] }
  0x25   : > { %v186_v19 = vadd.f32 %v185_v14, %v184_v16  ;;  %v283_v49 = vadd.f32 %v282_v40, %v281_v43  ;;  %v203_v62 = vsel %vm175_vm0, %v157_v59, 0.0  ;;  %v254_v63 = vmul.f32 %v152_v28, %v152_v28  ;;  %v165_v43 = vld [vmem:[%s702_s5 + $0xb0] sm:$0xff] }
  0x26   : > { %v290_v0 = vsel %vm175_vm0, %v252_v51, 0.0  ;;  %v205_v4 = vsel %vm175_vm0, %v158_v1, 0.0  ;;  %v255_v5 = vmul.f32 %v153_v35, %v153_v35  ;;  %v292_v6 = vsel %vm175_vm0, %v253_v57, 0.0 }
  0x27   : > { %v188_v25 = vadd.f32 %v187_v17, %v186_v19  ;;  %v285_v55 = vadd.f32 %v284_v46, %v283_v49  ;;  %v207_v10 = vsel %vm175_vm0, %v159_v7, 0.0  ;;  %v256_v11 = vmul.f32 %v154_v41, %v154_v41  ;;  %v161_v19 = vld [vmem:[%s702_s5 + $0x90] sm:$0xff]  ;;  %v166_v49 = vld [vmem:[%s702_s5 + $0xb8] sm:$0xff] }
  0x28   : > { %v294_v12 = vsel %vm175_vm0, %v254_v63, 0.0  ;;  %v209_v16 = vsel %vm175_vm0, %v160_v13, 0.0  ;;  %v257_v17 = vmul.f32 %v155_v47, %v155_v47  ;;  %v296_v18 = vsel %vm175_vm0, %v255_v5, 0.0 }
  0x29   : > { %v190_v29 = vadd.f32 %v189_v21, %v188_v25  ;;  %v287_v61 = vadd.f32 %v286_v52, %v285_v55  ;;  %v211_v22 = vsel %vm175_vm0, %v161_v19, 0.0  ;;  %v258_v23 = vmul.f32 %v156_v53, %v156_v53  ;;  %v162_v25 = vld [vmem:[%s702_s5 + $0x98] sm:$0xff]  ;;  %v167_v55 = vld [vmem:[%s702_s5 + $0xc0] sm:$0xff] }
  0x2a   : > { %v298_v24 = vsel %vm175_vm0, %v256_v11, 0.0  ;;  %v213_v28 = vsel %vm175_vm0, %v162_v25, 0.0  ;;  %v300_v30 = vsel %vm175_vm0, %v257_v17, 0.0  ;;  %v260_v35 = vmul.f32 %v158_v1, %v158_v1 }
  0x2b   : > { %v192_v36 = vadd.f32 %v191_v26, %v190_v29  ;;  %v289_v3 = vadd.f32 %v288_v58, %v287_v61  ;;  %v259_v29 = vmul.f32 %v157_v59, %v157_v59  ;;  %v217_v40 = vsel %vm175_vm0, %v164_v37, 0.0  ;;  %v168_v61 = vld [vmem:[%s702_s5 + $0xc8] sm:$0xff] }
  0x2c   : > { %v261_v41 = vmul.f32 %v159_v7, %v159_v7  ;;  %v219_v46 = vsel %vm175_vm0, %v165_v43, 0.0  ;;  %v262_v47 = vmul.f32 %v160_v13, %v160_v13  ;;  %v221_v52 = vsel %vm175_vm0, %v166_v49, 0.0 }
  0x2d   : > { %v194_v42 = vadd.f32 %v193_v31, %v192_v36  ;;  %v291_v9 = vadd.f32 %v290_v0, %v289_v3  ;;  %v163_v31 = vld [vmem:[%s702_s5 + $0xa0] sm:$0xff]  ;;  %v302_v36 = vsel %vm175_vm0, %v258_v23, 0.0  ;;  %v263_v53 = vmul.f32 %v161_v19, %v161_v19  ;;  %v169_v3 = vld [vmem:[%s702_s5 + $0xd0] sm:$0xff] }
  0x2e   : > { %v215_v34 = vsel %vm175_vm0, %v163_v31, 0.0  ;;  %v223_v58 = vsel %vm175_vm0, %v167_v55, 0.0  ;;  %v264_v59 = vmul.f32 %v162_v25, %v162_v25  ;;  %v225_v0 = vsel %vm175_vm0, %v168_v61, 0.0 }
  0x2f   : > { %v196_v48 = vadd.f32 %v195_v38, %v194_v42  ;;  %v293_v15 = vadd.f32 %v292_v6, %v291_v9  ;;  %v304_v42 = vsel %vm175_vm0, %v259_v29, 0.0  ;;  %v265_v1 = vmul.f32 %v163_v31, %v163_v31  ;;  %v170_v9 = vld [vmem:[%s702_s5 + $0xd8] sm:$0xff] }
  0x30   : > { %v227_v6 = vsel %vm175_vm0, %v169_v3, 0.0  ;;  %v266_v7 = vmul.f32 %v164_v37, %v164_v37  ;;  %v267_v13 = vmul.f32 %v165_v43, %v165_v43  ;;  %v268_v19 = vmul.f32 %v166_v49, %v166_v49 }
  0x31   : > { %v198_v54 = vadd.f32 %v197_v44, %v196_v48  ;;  %v295_v21 = vadd.f32 %v294_v12, %v293_v15  ;;  %v306_v48 = vsel %vm175_vm0, %v260_v35, 0.0  ;;  %v229_v12 = vsel %vm175_vm0, %v170_v9, 0.0  ;;  %v171_v15 = vld [vmem:[%s702_s5 + $0xe0] sm:$0xff] }
  0x32   : > { %v269_v25 = vmul.f32 %v167_v55, %v167_v55  ;;  %v270_v31 = vmul.f32 %v168_v61, %v168_v61  ;;  %v271_v37 = vmul.f32 %v169_v3, %v169_v3  ;;  %vm352_vm1 = vcmask (%p346_p13), 517120  }
  0x33   : > { %v200_v60 = vadd.f32 %v199_v50, %v198_v54  ;;  %v297_v27 = vadd.f32 %v296_v18, %v295_v21  ;;  %v308_v54 = vsel %vm175_vm0, %v261_v41, 0.0  ;;  %v231_v18 = vsel %vm175_vm0, %v171_v15, 0.0  ;;  %v172_v21 = vld [vmem:[%s702_s5 + $0xe8] sm:$0xff] }
  0x34   : > { %v272_v41 = vmul.f32 %v170_v9, %v170_v9  ;;  %v274_v49 = vmul.f32 %v172_v21, %v172_v21 }
  0x35   : > { %v202_v2 = vadd.f32 %v201_v56, %v200_v60  ;;  %v299_v33 = vadd.f32 %v298_v24, %v297_v27  ;;  %v310_v60 = vsel %vm175_vm0, %v262_v47, 0.0  ;;  %v233_v24 = vsel %vm175_vm0, %v172_v21, 0.0  ;;  %v173_v27 = vld [vmem:[%s702_s5 + $0xf0] sm:$0xff] }
  0x37   : > { %v204_v8 = vadd.f32 %v203_v62, %v202_v2  ;;  %v301_v39 = vadd.f32 %v300_v30, %v299_v33  ;;  %v312_v2 = vsel %vm175_vm0, %v263_v53, 0.0  ;;  %v235_v30 = vsel %vm175_vm0, %v173_v27, 0.0  ;;  %v174_v33 = vld [vmem:[%s702_s5 + $0xf8] sm:$0xff] }
  0x38   : > { %v275_v53 = vmul.f32 %v173_v27, %v173_v27 }
  0x39   : > { %v206_v14 = vadd.f32 %v205_v4, %v204_v8  ;;  %v303_v45 = vadd.f32 %v302_v36, %v301_v39  ;;  %v314_v8 = vsel %vm175_vm0, %v264_v59, 0.0  ;;  %v237_v36 = vsel %vm175_vm0, %v174_v33, 0.0 }
  0x3a   : > { %v336_v61 = vsel %vm175_vm0, %v275_v53, 0.0 }
  0x3b   : > { %v208_v20 = vadd.f32 %v207_v10, %v206_v14  ;;  %v305_v51 = vadd.f32 %v304_v42, %v303_v45  ;;  %v316_v14 = vsel %vm175_vm0, %v265_v1, 0.0  ;;  %v326_v42 = vsel %vm175_vm0, %v270_v31, 0.0 }
  0x3c   : > { %v273_v45 = vmul.f32 %v171_v15, %v171_v15 }
  0x3d   : > { %v210_v26 = vadd.f32 %v209_v16, %v208_v20  ;;  %v307_v57 = vadd.f32 %v306_v48, %v305_v51  ;;  %v318_v20 = vsel %vm175_vm0, %v266_v7, 0.0 }
  0x3f   : > { %v212_v32 = vadd.f32 %v211_v22, %v210_v26  ;;  %v309_v63 = vadd.f32 %v308_v54, %v307_v57  ;;  %v320_v26 = vsel %vm175_vm0, %v267_v13, 0.0  ;;  %v332_v54 = vsel %vm175_vm0, %v273_v45, 0.0 }
  0x40   : > { %v276_v57 = vmul.f32 %v174_v33, %v174_v33 }
  0x41   : > { %v214_v38 = vadd.f32 %v213_v28, %v212_v32  ;;  %v311_v5 = vadd.f32 %v310_v60, %v309_v63  ;;  %v322_v32 = vsel %vm175_vm0, %v268_v19, 0.0 }
  0x43   : > { %v216_v44 = vadd.f32 %v215_v34, %v214_v38  ;;  %v313_v11 = vadd.f32 %v312_v2, %v311_v5  ;;  %v324_v38 = vsel %vm175_vm0, %v269_v25, 0.0 }
  0x45   : > { %v218_v50 = vadd.f32 %v217_v40, %v216_v44  ;;  %v315_v17 = vadd.f32 %v314_v8, %v313_v11 }
  0x47   : > { %v220_v56 = vadd.f32 %v219_v46, %v218_v50  ;;  %v317_v23 = vadd.f32 %v316_v14, %v315_v17  ;;  %v328_v46 = vsel %vm175_vm0, %v271_v37, 0.0  ;;  %v330_v50 = vsel %vm175_vm0, %v272_v41, 0.0 }
  0x49   : > { %v222_v62 = vadd.f32 %v221_v52, %v220_v56  ;;  %v319_v29 = vadd.f32 %v318_v20, %v317_v23 }
  0x4b   : > { %v224_v4 = vadd.f32 %v223_v58, %v222_v62  ;;  %v321_v35 = vadd.f32 %v320_v26, %v319_v29  ;;  %v334_v58 = vsel %vm175_vm0, %v274_v49, 0.0 }
  0x4d   : > { %v226_v10 = vadd.f32 %v225_v0, %v224_v4  ;;  %v323_v40 = vadd.f32 %v322_v32, %v321_v35  ;;  %v338_v0 = vsel %vm175_vm0, %v276_v57, 0.0 }
  0x4f   : > { %v228_v16 = vadd.f32 %v227_v6, %v226_v10  ;;  %v325_v44 = vadd.f32 %v324_v38, %v323_v40  ;;  %v627_v10 = vmov (%p346_p13), 0.0  }
  0x50   : > { %353 = vst.msk [vmem:[#allocation5] sm:$0x3] (%p346_p13), %vm352_vm1, %v627_v10 }
  0x51   : > { %v230_v22 = vadd.f32 %v229_v12, %v228_v16  ;;  %v327_v48 = vadd.f32 %v326_v42, %v325_v44 }
  0x53   : > { %v232_v28 = vadd.f32 %v231_v18, %v230_v22  ;;  %v329_v52 = vadd.f32 %v328_v46, %v327_v48 }
  0x55   : > { %v234_v34 = vadd.f32 %v233_v24, %v232_v28  ;;  %v331_v56 = vadd.f32 %v330_v50, %v329_v52 }
  0x57   : > { %v236_v39 = vadd.f32 %v235_v30, %v234_v34  ;;  %v333_v60 = vadd.f32 %v332_v54, %v331_v56 }
  0x59   : > { %v238_v43 = vadd.f32 %v237_v36, %v236_v39  ;;  %v335_v63 = vadd.f32 %v334_v58, %v333_v60 }
  0x5b   : > { %v239_v47 = vrot.slane %v238_v43, 4  ;;  %v337_v2 = vadd.f32 %v336_v61, %v335_v63 }
  0x5d   : > { %v240_v51 = vadd.f32 %v239_v47, %v238_v43  ;;  %v339_v3 = vadd.f32 %v338_v0, %v337_v2 }
  0x5f   : > { %v241_v55 = vrot.slane %v240_v51, 2  ;;  %v340_v4 = vrot.slane %v339_v3, 4 }
  0x61   : > { %v242_v59 = vadd.f32 %v241_v55, %v240_v51  ;;  %v341_v5 = vadd.f32 %v340_v4, %v339_v3 }
  0x63   : > { %v243_v62 = vrot.slane %v242_v59, 1  ;;  %v342_v6 = vrot.slane %v341_v5, 2 }
  0x65   : > { %v244_v1 = vadd.f32 %v243_v62, %v242_v59  ;;  %v343_v7 = vadd.f32 %v342_v6, %v341_v5  ;;  %351 = sbr.rel (!%p346_p13) target bundleno = 106 (0x6a), region = 32 }
  0x67   : > { %v344_v8 = vrot.slane %v343_v7, 1 }
  0x69   : > { %v345_v9 = vadd.f32 %v344_v8, %v343_v7 }
  0x6a PF: > { %v354_v11 = vld [vmem:[#allocation5] sm:$0x3]  ;;  %vm355_vm2 = vcmask 1040384   ;;  %p457_p0 = scmp.eq.s32.totalorder %s431_s12, 1  ;;  %vm358_vm3 = vcmask 517120   ;;  %s368_s15 = sshll.u32 %s831_s1, 4  ;;  %s369_s15 = int_to_ptr.hbm [resolvable:$true] %s368_s15 }
  0x6b   : > { %v356_v12 = vsel %vm355_vm2, %v244_v1, %v345_v9  ;;  %s628_s16 = smov [#allocation5]  }
  0x6c   : > { %v357_v13 = vadd.f32 %v356_v12, %v354_v11  ;;  %s366_s17 = sshll.u32 %s628_s16, 4  ;;  %s367_s17 = int_to_ptr.vmem [resolvable:$true] %s366_s17 }
  0x6e   : > { %359 = vst.msk [vmem:[#allocation5] sm:$0x3] %vm358_vm3, %v357_v13 }
  0x6f   : > { %449 = dma.vmem_to_hbm [thread:$0]  (%p457_p0), %s367_s17, 32, %s369_s15, [#allocation4]  }
  0x70   : > { %598 = dma.done.wait (%p457_p0), [#allocation4], 32  }
  0x71   : > { %600 = vsyncadd (%p457_p0), [#allocation4], 4294967264 }
  0x72 PF: > { %s15_s11 = sadd.s32 1, %s623_s11   ;;  %s834_s6 = smov %s607_s7 }
  0x73   : > { %p12_p1 = scmp.ge.s32.totalorder %s15_s11, 4   ;;  %s835_s7 = smov %s611_s8 }
  0x74   : > { %s836_s8 = smov %s690_s18  ;;  %s837_s9 = smov %s619_s10 }
  0x75   : > { %s838_s10 = smov %s840_s13  ;;  %14 = sbr.rel (!%p12_p1) target bundleno = 5 (0x5), region = 65 }
  0x7a   :  { %382 = vsyncpa [#allocation3], 1 }
  0x7b   :  { %384 = vsyncpa [#allocation3 + $0x1], 1 }
  0x7c   :  { %385 = vsyncpa [#allocation4], 1 }
  0x7d   :  { %387 = vsyncpa [#allocation4 + $0x1], 1 }

</bundles_post_ra>
